<compile_context>
chip_gen: v7x
topology: tpu7x:2x2x1
jax: 0.10.0
libtpu: 0.0.40
codegen_flags: <defaults>
</compile_context>

<pallas_src>
import numpy as np
import jax
import jax.numpy as jnp
from jax.experimental import pallas as pl
from jax.experimental.pallas import tpu as pltpu


# ----------------------------------------------------------------------------
# Synthetic MDM sub-model (stand-in for m_individual / m_interaction).
# Semantics:  out = mask * (x @ W + cond @ Wc + temb(t) + bias)
# ----------------------------------------------------------------------------
class SyntheticMDM:
    def __init__(self, params):
        self.params = params  # (W (D,D), Wc (Dc,D), bias (1,D), Wt (D,))

    def __call__(self, x, timesteps, cond=None, mask=None):
        return _ref_mdm(self.params, x, timesteps, cond, mask)


def _ref_mdm(params, x, t, cond, mask):
    W, Wc, bias, Wt = params
    temb = (t.astype(jnp.float32)[:, None] / 1000.0) * Wt[None, :]          # (B2, D)
    h = (jnp.einsum('btd,de->bte', x, W, precision=jax.lax.Precision.HIGHEST)
         + (cond @ Wc)[:, None, :] + temb[:, None, :] + bias[None])
    return h * mask.astype(jnp.float32)[..., None]


# ----------------------------------------------------------------------------
# Fused dual-MDM + CFG kernel.
#
# Per (batch b, row-tile t) of the (B, T, D) input:
#   h      = x @ [W_int | W_ind]                      (one MXU dot, (TM, 2D))
#   h_mix  = (1-w) * h[:, :D] + w * h[:, D:]          (scheduler blend, SMEM scalars)
#   out    = mask_rows * (h_mix + a_blend[b])         (a_blend pre-folds temb/bias/
#                                                      guidance-scaled cond adds)
# ----------------------------------------------------------------------------
def _fused_cfg_kernel(s_ref, x_ref, wcat_ref, add_ref, m_ref, o_ref):
    d = o_ref.shape[-1]
    x = x_ref[0]                                                # (TM, D)  io dtype
    h = jnp.dot(x, wcat_ref[...],
                preferred_element_type=jnp.float32)             # (TM, 2D) f32 acc
    # NOTE: default matmul precision is within 1e-4 of the HIGHEST-precision f32
    # reference at D=128; for production D pass precision=HIGHEST or loosen tol.
    h_mix = h[:, :d] * s_ref[0] + h[:, d:] * s_ref[1]           # (TM, D)  scheduler blend
    out = (h_mix + add_ref[0].astype(jnp.float32)) * m_ref[0]   # (TM, D) * (TM, 1)
    o_ref[0] = out.astype(o_ref.dtype)


def _pick_tm(T, D, itemsize, vmem_budget_bytes=16 * 1024 * 1024):
    """Largest legal row tile: whole T if its (double-buffered) x+out tiles fit a
    conservative VMEM budget, else the largest multiple-of-8 divisor that fits."""
    def fits(tm):
        return 2 * 2 * tm * D * itemsize <= vmem_budget_bytes   # x + out, 2 buffers each
    if fits(T):
        return T                                                # == full dim: always legal
    cands = [tm for tm in range(8, T, 8) if T % tm == 0 and fits(tm)]
    return max(cands) if cands else T


def _cfg_cond_add(params, timesteps, cond, s):
    """Hoisted per-batch conditioning add, pre-blended with the guidance scale.

    cfg_m = o_uncond + s*(o_cond - o_uncond) = mask * (x@W + add) with
    add = (temb + bias) + s * (cond @ Wc)   (uncond half has cond == 0).
    """
    W, Wc, bias, Wt = params
    temb = (timesteps.astype(jnp.float32)[:, None] / 1000.0) * Wt[None, :]  # (B, D)
    return temb + bias + s * (cond @ Wc)                                    # (B, D)


def _dual_cfg_forward(params_ind, params_int, s_ind, s_int, sched,
                      x, timesteps, cond, mask, io_dtype):
    B, T, D = x.shape

    # Scheduler weight, computed on device (no host sync).
    w = sched(timesteps)
    w = jnp.asarray(w, dtype=jnp.float32)

    # Hoisted conditioning adds (one small batched matmul per sub-model, no
    # zero-cond work), pre-blended with the scheduler weight -> single stream.
    add_int = _cfg_cond_add(params_int, timesteps, cond, s_int)             # (B, D)
    add_ind = _cfg_cond_add(params_ind, timesteps, cond, s_ind)             # (B, D)
    a_blend = ((1.0 - w) * add_int + w * add_ind)[:, None, :]               # (B, 1, D)

    # Concatenate the two weight matrices along N -> one (D, 2D) MXU dot.
    wcat = jnp.concatenate([params_int[0], params_ind[0]], axis=1)          # (D, 2D)

    # (1-w, w) scalars ride in SMEM.
    scalars = jnp.stack([1.0 - w, w]).astype(jnp.float32)                   # (2,)

    # bf16 (or f32) I/O at the kernel boundary; epilogue math stays f32.
    x_io = x.astype(io_dtype)
    wcat_io = wcat.astype(io_dtype)
    a_io = a_blend.astype(io_dtype)
    m_io = mask.astype(jnp.float32).reshape(B, T, 1)

    tm = _pick_tm(T, D, jnp.dtype(io_dtype).itemsize)
    nT = T // tm

    out = pl.pallas_call(
        _fused_cfg_kernel,
        out_shape=jax.ShapeDtypeStruct((B, T, D), io_dtype),
        grid=(B, nT),
        in_specs=[
            pl.BlockSpec(memory_space=pltpu.MemorySpace.SMEM),              # (1-w, w)
            pl.BlockSpec((1, tm, D), lambda b, t: (b, t, 0)),               # x rows
            pl.BlockSpec((D, 2 * D), lambda b, t: (0, 0)),                  # Wcat (resident)
            pl.BlockSpec((1, 1, D), lambda b, t: (b, 0, 0)),                # a_blend per batch
            pl.BlockSpec((1, tm, 1), lambda b, t: (b, t, 0)),               # mask rows
        ],
        out_specs=pl.BlockSpec((1, tm, D), lambda b, t: (b, t, 0)),
        compiler_params=pltpu.CompilerParams(
            dimension_semantics=("parallel", "parallel"),
            vmem_limit_bytes=32 * 1024 * 1024,
        ),
    )(scalars, x_io, wcat_io, a_io, m_io)

    return out


# ----------------------------------------------------------------------------
# Module wrapper mirroring the PyTorch forward semantics.
# ----------------------------------------------------------------------------
class ClassifierFreeSampleDualMDM:
    def __init__(self, m_individual, m_interaction, s_individual, s_interaction,
                 s_composition_func, s_composition_value, io_dtype=jnp.bfloat16):
        self.m_individual = m_individual
        self.m_interaction = m_interaction
        self.s_individual = float(s_individual)
        self.s_interaction = float(s_interaction)
        self.s_composition = self.weight(s_composition_func, s_composition_value)
        self.io_dtype = io_dtype
        self._forward = jax.jit(self._forward_impl)

    def weight(self, func, value):
        # (original prints the scheduler config; omitted to keep stdout clean)
        if func == 'exp':
            return lambda t: jnp.exp(-value * (1000.0 - t.astype(jnp.float32)))[0]
        elif func == 'exp-inv':
            return lambda t: 1.0 - jnp.exp(-value * (1000.0 - t.astype(jnp.float32)))[0]
        elif func == 'lin':
            return lambda t: 1.0 - ((1000.0 - t.astype(jnp.float32)) / 1000.0)[0]
        elif func == 'const':
            return lambda t: jnp.float32(value)
        else:
            raise ValueError('Unknown function')

    def _forward_impl(self, x, timesteps, cond, mask):
        return _dual_cfg_forward(self.m_individual.params, self.m_interaction.params,
                                 self.s_individual, self.s_interaction,
                                 self.s_composition, x, timesteps, cond, mask,
                                 self.io_dtype)

    def __call__(self, x, timesteps, cond=None, mask=None):
        B, T, _ = x.shape
        if mask is None:
            mask = jnp.ones((B, T), dtype=jnp.float32)
        return self._forward(x, timesteps, cond, mask)


# ----------------------------------------------------------------------------
# Pure-JAX reference, mirroring the original PyTorch forward literally.
# ----------------------------------------------------------------------------
def _ref_forward(model, x, timesteps, cond, mask):
    B = x.shape[0]
    xc = jnp.concatenate([x, x], axis=0)
    tc = jnp.concatenate([timesteps, timesteps], axis=0)
    cc = jnp.concatenate([cond, jnp.zeros_like(cond)], axis=0)
    mc = jnp.concatenate([mask, mask], axis=0)
    o_int = model.m_interaction(xc, tc, cond=cc, mask=mc)
    o_ind = model.m_individual(xc, tc, cond=cc, mask=mc)
    cfg_int = o_int[B:] + model.s_interaction * (o_int[:B] - o_int[B:])
    cfg_ind = o_ind[B:] + model.s_individual * (o_ind[:B] - o_ind[B:])
    w = model.s_composition(timesteps)
    return cfg_int + w * (cfg_ind - cfg_int)


if __name__ == "__main__":
    B, T, D, Dc = 2, 256, 128, 64

    key = jax.random.PRNGKey(0)
    keys = jax.random.split(key, 12)

    def init_params(ks):
        W = jax.random.normal(ks[0], (D, D), jnp.float32) * 0.1
        Wc = jax.random.normal(ks[1], (Dc, D), jnp.float32) * 0.1
        bias = jax.random.normal(ks[2], (1, D), jnp.float32) * 0.01
        Wt = jax.random.normal(ks[3], (D,), jnp.float32) * 0.1
        return (W, Wc, bias, Wt)

    params_individual = init_params(keys[0:4])
    params_interaction = init_params(keys[4:8])

    x = jax.random.normal(keys[8], (B, T, D), jnp.float32)
    cond = jax.random.normal(keys[9], (B, Dc), jnp.float32)
    mask = (jax.random.uniform(keys[10], (B, T)) > 0.2).astype(jnp.float32)
    timesteps = jnp.array([700, 700], dtype=jnp.int32)

    common = dict(
        m_individual=SyntheticMDM(params_individual),
        m_interaction=SyntheticMDM(params_interaction),
        s_individual=2.5,
        s_interaction=3.0,
        s_composition_func='exp',
        s_composition_value=0.01,
    )

    # Pure-JAX reference mirroring the PyTorch forward (f32, HIGHEST precision).
    model_bf16 = ClassifierFreeSampleDualMDM(**common, io_dtype=jnp.bfloat16)
    ref = jax.block_until_ready(_ref_forward(model_bf16, x, timesteps, cond, mask))

    # Default production path: bf16 I/O, f32 accumulation (loose tolerance).
    out_bf16 = jax.block_until_ready(model_bf16(x, timesteps, cond=cond, mask=mask))
    np.testing.assert_allclose(np.asarray(out_bf16, dtype=np.float32), np.asarray(ref),
                               rtol=5e-2, atol=5e-2)

    # f32 I/O path: tight numerical check against the literal reference.
    model_f32 = ClassifierFreeSampleDualMDM(**common, io_dtype=jnp.float32)
    out_f32 = jax.block_until_ready(model_f32(x, timesteps, cond=cond, mask=mask))
    np.testing.assert_allclose(np.asarray(out_f32), np.asarray(ref),
                               rtol=1e-4, atol=1e-4)

    print("KERNEL_OK")
</pallas_src>

<mosaic_0001>
module attributes {stable_mosaic.version = 11 : i64} {
  func.func @_fused_cfg_kernel(%arg0: i32, %arg1: i32, %arg2: memref<2xf32, #tpu.memory_space<smem>>, %arg3: memref<1x256x128xbf16, #tpu.memory_space<vmem>>, %arg4: memref<128x256xbf16, #tpu.memory_space<vmem>>, %arg5: memref<1x1x128xbf16, #tpu.memory_space<vmem>>, %arg6: memref<1x256x1xf32, #tpu.memory_space<vmem>>, %arg7: memref<1x256x128xbf16, #tpu.memory_space<vmem>>) attributes {dimension_semantics = [#tpu.dimension_semantics<parallel>, #tpu.dimension_semantics<parallel>], iteration_bounds = array<i64: 2, 1>, scalar_prefetch = 0 : i64, scratch_operands = 0 : i64, tpu.core_type = #tpu.core_type<tc>, window_params = [{transform_indices = @transform_0, window_bounds = array<i64: 2>}, {transform_indices = @transform_1, window_bounds = array<i64: 1, 256, 128>}, {pipeline_mode = #tpu.pipeline_mode<synchronous>, transform_indices = @transform_2, window_bounds = array<i64: 128, 256>}, {transform_indices = @transform_3, window_bounds = array<i64: 1, 1, 128>}, {transform_indices = @transform_4, window_bounds = array<i64: 1, 256, 1>}, {transform_indices = @transform_5, window_bounds = array<i64: 1, 256, 128>}]} {
    %c0 = arith.constant 0 : index
    %c0_0 = arith.constant 0 : index
    %c0_1 = arith.constant 0 : index
    %0 = vector.load %arg3[%c0, %c0_0, %c0_1] : memref<1x256x128xbf16, #tpu.memory_space<vmem>>, vector<1x256x128xbf16>
    %1 = vector.shape_cast %0 : vector<1x256x128xbf16> to vector<256x128xbf16>
    %c0_2 = arith.constant 0 : index
    %c0_3 = arith.constant 0 : index
    %2 = vector.load %arg4[%c0_2, %c0_3] : memref<128x256xbf16, #tpu.memory_space<vmem>>, vector<128x256xbf16>
    %cst = arith.constant dense<0.000000e+00> : vector<256x256xf32>
    %3 = tpu.matmul %1, %2, %cst {dimension_numbers = #tpu.dot_dimension_numbers<[1], [0], [0], [1], [0, 0, 1, 1], [], []>} : vector<256x128xbf16>, vector<128x256xbf16>, vector<256x256xf32> -> vector<256x256xf32>
    %4 = vector.extract_strided_slice %3 {offsets = [0, 0], sizes = [256, 128], strides = [1, 1]} : vector<256x256xf32> to vector<256x128xf32>
    %c0_4 = arith.constant 0 : index
    %5 = memref.load %arg2[%c0_4] : memref<2xf32, #tpu.memory_space<smem>>
    %6 = vector.broadcast %5 : f32 to vector<256x128xf32>
    %7 = arith.mulf %4, %6 : vector<256x128xf32>
    %8 = vector.extract_strided_slice %3 {offsets = [0, 128], sizes = [256, 128], strides = [1, 1]} : vector<256x256xf32> to vector<256x128xf32>
    %c1 = arith.constant 1 : index
    %9 = memref.load %arg2[%c1] : memref<2xf32, #tpu.memory_space<smem>>
    %10 = vector.broadcast %9 : f32 to vector<256x128xf32>
    %11 = arith.mulf %8, %10 : vector<256x128xf32>
    %12 = arith.addf %7, %11 : vector<256x128xf32>
    %c0_5 = arith.constant 0 : index
    %c0_6 = arith.constant 0 : index
    %c0_7 = arith.constant 0 : index
    %13 = vector.load %arg5[%c0_5, %c0_6, %c0_7] : memref<1x1x128xbf16, #tpu.memory_space<vmem>>, vector<1x1x128xbf16>
    %14 = vector.shape_cast %13 : vector<1x1x128xbf16> to vector<1x128xbf16>
    %15 = arith.extf %14 : vector<1x128xbf16> to vector<1x128xf32>
    %16 = vector.broadcast %15 : vector<1x128xf32> to vector<256x128xf32>
    %17 = arith.addf %12, %16 : vector<256x128xf32>
    %c0_8 = arith.constant 0 : index
    %c0_9 = arith.constant 0 : index
    %c0_10 = arith.constant 0 : index
    %18 = vector.load %arg6[%c0_8, %c0_9, %c0_10] : memref<1x256x1xf32, #tpu.memory_space<vmem>>, vector<1x256x1xf32>
    %19 = vector.shape_cast %18 : vector<1x256x1xf32> to vector<256x1xf32>
    %20 = vector.broadcast %19 : vector<256x1xf32> to vector<256x128xf32>
    %21 = arith.mulf %17, %20 : vector<256x128xf32>
    %22 = arith.truncf %21 : vector<256x128xf32> to vector<256x128xbf16>
    %c0_11 = arith.constant 0 : index
    %c0_12 = arith.constant 0 : index
    %c0_13 = arith.constant 0 : index
    %23 = vector.load %arg7[%c0_11, %c0_12, %c0_13] : memref<1x256x128xbf16, #tpu.memory_space<vmem>>, vector<1x256x128xbf16>
    %24 = vector.shape_cast %23 : vector<1x256x128xbf16> to vector<256x128xbf16>
    %25 = vector.shape_cast %22 : vector<256x128xbf16> to vector<1x256x128xbf16>
    tpu.vector_store %arg7[%c0_11, %c0_12, %c0_13], %25 {strides = array<i32>} : memref<1x256x128xbf16, #tpu.memory_space<vmem>>, vector<1x256x128xbf16>,
    return
  }
  func.func @transform_0(%arg0: i32, %arg1: i32) -> i32 {
    %c0_i32 = arith.constant 0 : i32
    %c0_i32_0 = arith.constant 0 : i32
    return %c0_i32 : i32
  }
  func.func @transform_1(%arg0: i32, %arg1: i32) -> (i32, i32, i32) {
    %c0_i32 = arith.constant 0 : i32
    %c0_i32_0 = arith.constant 0 : i32
    return %arg0, %arg1, %c0_i32 : i32, i32, i32
  }
  func.func @transform_2(%arg0: i32, %arg1: i32) -> (i32, i32) {
    %c0_i32 = arith.constant 0 : i32
    %c0_i32_0 = arith.constant 0 : i32
    %c0_i32_1 = arith.constant 0 : i32
    return %c0_i32, %c0_i32_0 : i32, i32
  }
  func.func @transform_3(%arg0: i32, %arg1: i32) -> (i32, i32, i32) {
    %c0_i32 = arith.constant 0 : i32
    %c0_i32_0 = arith.constant 0 : i32
    %c0_i32_1 = arith.constant 0 : i32
    return %arg0, %c0_i32, %c0_i32_0 : i32, i32, i32
  }
  func.func @transform_4(%arg0: i32, %arg1: i32) -> (i32, i32, i32) {
    %c0_i32 = arith.constant 0 : i32
    %c0_i32_0 = arith.constant 0 : i32
    return %arg0, %arg1, %c0_i32 : i32, i32, i32
  }
  func.func @transform_5(%arg0: i32, %arg1: i32) -> (i32, i32, i32) {
    %c0_i32 = arith.constant 0 : i32
    %c0_i32_0 = arith.constant 0 : i32
    return %arg0, %arg1, %c0_i32 : i32, i32, i32
  }
}

</mosaic_0001>

<bundles_post_ra>
// kernel: _forward_impl.1
= control target key start
LH: loop header
LB: loop body
LE: loop exit
PB: predicated region body
PF: predicated region fallthrough
CT: control target
= control target key end

     0   :  { %10 = vsyncpa [#allocation4], 0  ;;  %s2297_s0 = inlined_call_operand.vmem [shape: f32[2], index: 0, kind: input, shape index: {}]   ;;  %s2298_s1 = inlined_call_operand.vmem [shape: bf16[2,256,128], index: 1, kind: input, shape index: {}]   ;;  %s2299_s2 = inlined_call_operand.vmem [shape: bf16[128,256], index: 2, kind: input, shape index: {}]   ;;  %s2300_s3 = inlined_call_operand.vmem [shape: bf16[2,1,128], index: 3, kind: input, shape index: {}]   ;;  %s2301_s4 = inlined_call_operand.vmem [shape: f32[2,256,1], index: 4, kind: input, shape index: {}]   ;;  %s2302_s5 = inlined_call_operand.hbm [shape: bf16[2,256,128], index: 5, kind: output, shape index: {}]  }
   0x1   :  { %11 = vsyncpa [#allocation3], 0 }
   0x2   :  { %13 = vsyncpa [#allocation3 + $0x1], 0  ;;  %s1865_s18 = smov 0   ;;  %s1867_s19 = smov 0  }
   0x3   :  { %s1869_s20 = smov 0   ;;  %s1871_s21 = smov 0  }
   0x4   :  { %s1873_s22 = smov 0   ;;  %s1875_s23 = smov 0  }
   0x5 LB: > { %s1392_s24 = sadd.s32 4294967295, %s1828_s23   ;;  %s1393_s25 = sadd.s32 4294967294, %s1828_s23   ;;  %s1828_s23 = sphi %s1875_s23, %s19_s23   ;;  %s1824_s22 = sphi %s1873_s22, %s2311_s22   ;;  %s1820_s21 = sphi %s1871_s21, %s2310_s21   ;;  %s1816_s20 = sphi %s1869_s20, %s2309_s20   ;;  %s1812_s19 = sphi %s1867_s19, %s2308_s19   ;;  %s1808_s18 = sphi %s1865_s18, %s2307_s18  }
   0x6   : > { %s31_s26 = sadd.s32 1, %s1824_s22  ;;  %s164_s27 = sadd.s32 1, %s1816_s20 }
   0x7   : > { %p33_p0 = scmp.ge.s32.totalorder %s31_s26, 2  ;;  %p174_p1 = scmp.ne.s32.totalorder %s1816_s20, %s1812_s19 }
   0x8   : > { %p175_p2 = scmp.eq.s32.totalorder %s1392_s24, 1  ;;  %p180_p3 = scmp.ne.s32.totalorder %s1812_s19, %s1808_s18 }
   0x9   : > { %s2313_s26 = smov (%p33_p0, %s31_s26), 0  ;;  %p181_p5 = scmp.eq.s32.totalorder %s1393_s25, 1 }
   0xa   : > { %p1905_p4 = por %p175_p2, %p174_p1  ;;  %s159_s29 = ssub.s32 %s1824_s22, %s2313_s26 }
   0xb   : > { %p1394_p6 = scmp.ge.s32.totalorder %s1828_s23, 1  ;;  %p162_p7 = scmp.eq.s32.totalorder %s159_s29, 0 }
   0xc   : > { %p1912_p8 = por %p181_p5, %p180_p3  ;;  %p188_p9 = scmp.lt.s32.totalorder %s1828_s23, 3 }
   0xd   : > { %s1918_s6 = scalar_select %p162_p7, %s1816_s20, %s164_s27  }
   0xe   : > { %p1920_p10 = pnand %p1394_p6, %p188_p9  ;;  %p1924_p11 = scmp.eq.s32.totalorder %s1392_s24, 0 }
   0xf   : > { %s201_s11 = sshll.u32 %s2297_s0, 4  ;;  %s202_s11 = int_to_ptr.vmem [resolvable:$true] %s201_s11 }
  0x10   : > { %p1626_p12 = pneg %p1920_p10  ;;  %s1731_s12 = scalar_lea.vmem %s202_s11, 16 }
  0x11   : > { %p1732_p0 = scmp.ne.s32.totalorder %s202_s11, %s1731_s12  ;;  %p1739_p5 = scmp.lt.s32.totalorder %s202_s11, %s202_s11 }
  0x12   : > { %p1627_p13 = pnand %p1924_p11, %p1626_p12  ;;  %p1740_p6 = scmp.lt.s32.totalorder %s1731_s12, %s1731_s12 }
  0x14   : > { %p1733_p1 = pneg %p1627_p13  ;;  %p1741_p7 = por %p1740_p6, %p1739_p5 }
  0x16   : > { %p1734_p2 = pnand %p1733_p1, %p1732_p0 }
  0x18   : > { %p1735_p3 = pneg %p1734_p2 }
  0x1a   : > { %p1742_p9 = pnand %p1741_p7, %p1735_p3 }
  0x1c   : > { %1745 = shalt.err (!%p1742_p9)
}
  0x1d   : > { %s1830_s13 = smov [#allocation2]   ;;  %249 = sbr.rel (%p1920_p10) target bundleno = 370 (0x172), region = 40 }
  0x1e   : > { %1629 = dma.vmem_to_smem (!%p1627_p13), %s202_s11, 16, %s1830_s13, [#allocation4]  }
  0x24   : > { %1799 = dma.done.wait (%p1924_p11), [#allocation4], 16  }
  0x25   : > { %1801 = vsyncadd (%p1924_p11), [#allocation4], 4294967280 }
  0x26   : > { %255 = sfence }
  0x27   : > { %v1691_v0 = vld [vmem:[%s2299_s2 + $0x4] ss:$8 sps:$4 sm:$0xff]   ;;  %p295_p12 = scmp.lt.s32.totalorder %s1820_s21, 1  ;;  %v1693_v1 = vld [vmem:[%s2299_s2] ss:$8 sps:$4 sm:$0xff]   ;;  %v1831_v2 = vmov 0  }
  0x28   : > { %575 = vmatprep.mubr.bf16.mxu0 %v1831_v2  ;;  %655 = vmatprep.mubr.bf16.mxu1 %v1831_v2  ;;  %v1694_v3 = vld [vmem:[%s2299_s2 + $0x14] ss:$8 sps:$4 sm:$0xff]   ;;  %v1696_v4 = vld [vmem:[%s2299_s2 + $0x10] ss:$8 sps:$4 sm:$0xff]   ;;  %v1697_v5 = vld [vmem:[%s2299_s2 + $0x24] ss:$8 sps:$4 sm:$0xff]  }
  0x29   : > { %543 = vmatprep.subr.bf16.mxu0 %v1691_v0  ;;  %1604 = vmatprep.subr.bf16.mxu1 %v1691_v0  ;;  %s1954_s27 = scalar_select %p295_p12, %s1820_s21, 1  ;;  %v1699_v6 = vld [vmem:[%s2299_s2 + $0x20] ss:$8 sps:$4 sm:$0xff]   ;;  %v1700_v7 = vld [vmem:[%s2299_s2 + $0x34] ss:$8 sps:$4 sm:$0xff]  }
  0x2a   : > { %544 = vmatpush1.bf16.msra.mxu0 %v1693_v1  ;;  %1612 = vmatpush1.bf16.msra.mxu1 %v1693_v1  ;;  %v1702_v8 = vld [vmem:[%s2299_s2 + $0x30] ss:$8 sps:$4 sm:$0xff]   ;;  %v1703_v9 = vld [vmem:[%s2299_s2 + $0x44] ss:$8 sps:$4 sm:$0xff]   ;;  %v1705_v10 = vld [vmem:[%s2299_s2 + $0x40] ss:$8 sps:$4 sm:$0xff]  }
  0x2b   : > { %545 = vmatprep.subr.bf16.mxu0 %v1694_v3  ;;  %1605 = vmatprep.subr.bf16.mxu1 %v1694_v3  ;;  %s1474_s10 = sshll.u32 %s1954_s27, 7  ;;  %s1475_s8 = sshll.u32 %s1954_s27, 8  ;;  %v1706_v11 = vld [vmem:[%s2299_s2 + $0x54] ss:$8 sps:$4 sm:$0xff]   ;;  %v1708_v12 = vld [vmem:[%s2299_s2 + $0x50] ss:$8 sps:$4 sm:$0xff]  }
  0x2c   : > { %1690 = vset.pattern.permute.xlu1 %v1831_v2  ;;  %1689 = vset.pattern.permute.xlu0 %v1831_v2  ;;  %s1974_s17 = scalar_lea.vmem %s2298_s1, %s1474_s10  ;;  %s1992_s15 = scalar_lea.vmem %s2301_s4, %s1475_s8  ;;  %v1709_v15 = vld [vmem:[%s2299_s2 + $0x64] ss:$8 sps:$4 sm:$0xff]   ;;  %v1711_v18 = vld [vmem:[%s2299_s2 + $0x60] ss:$8 sps:$4 sm:$0xff]   ;;  %v1712_v19 = vld [vmem:[%s2299_s2 + $0x74] ss:$8 sps:$4 sm:$0xff]  }
  0x2d   : > { %v876_v13 = vld [vmem:[%s1992_s15 + $0x10] sm:$0xff]  ;;  %v874_v14 = vld [vmem:[%s1992_s15] sm:$0xff]  ;;  %v877_v16 = vld [vmem:[%s1992_s15 + $0x18] sm:$0xff]  ;;  %s1436_s13 = sld [smem:[#allocation2 + $0x1]]  ;;  %s306_s16 = scalar_lea.vmem %s2300_s3, %s1954_s27 }
  0x2e   : > { %546 = vmatpush1.bf16.msra.mxu0 %v1696_v4  ;;  %1613 = vmatpush1.bf16.msra.mxu1 %v1696_v4  ;;  %v875_v17 = vld [vmem:[%s1992_s15 + $0x8] sm:$0xff]  ;;  %v878_v21 = vld [vmem:[%s1992_s15 + $0x20] sm:$0xff]  ;;  %v1714_v22 = vld [vmem:[%s2299_s2 + $0x70] ss:$8 sps:$4 sm:$0xff]   ;;  %s291_s27 = sand.u32 1, %s1812_s19   ;;  %s1508_s29 = sshll.u32 %s1820_s21, 11 }
  0x2f   : > { %547 = vmatprep.subr.bf16.mxu0 %v1697_v5  ;;  %1606 = vmatprep.subr.bf16.mxu1 %v1697_v5  ;;  %v879_v20 = vld [vmem:[%s1992_s15 + $0x28] sm:$0xff]  ;;  %v1715_v23 = vld [vmem:[%s1974_s17] sm:$0xff]   ;;  %v881_v25 = vld [vmem:[%s1992_s15 + $0x38] sm:$0xff]  ;;  %s1399_s24 = sshll.u32 %s291_s27, 7  ;;  %s2243_s11 = scalar_lea.hbm %s2302_s5, %s1508_s29 }
  0x30   : > { %918 = vperm.xlu1 %1690, %v876_v13   ;;  %908 = vperm.xlu0 %1689, %v874_v14   ;;  %v1716_v24 = vld [vmem:[%s1974_s17 + $0x40] sm:$0xff]   ;;  %v880_v26 = vld [vmem:[%s1992_s15 + $0x30] sm:$0xff]  ;;  %v883_v27 = vld [vmem:[%s1992_s15 + $0x48] sm:$0xff]  ;;  %v838_v13 = vlaneseq  ;;  %s2132_s25 = scalar_lea.vmem [#allocation5], %s1399_s24  ;;  %s2251_s21 = scalar_lea.sflag [#allocation3], %s291_s27 }
  0x31   : > { %v882_v28 = vld [vmem:[%s1992_s15 + $0x40] sm:$0xff]  ;;  %v1717_v29 = vld [vmem:[%s1974_s17 + $0x8] sm:$0xff]   ;;  %v885_v31 = vld [vmem:[%s1992_s15 + $0x58] sm:$0xff]  ;;  %s1274_s7 = sshll.u32 %s2132_s25, 4  ;;  %s1832_s12 = smov [#allocation5]   ;;  %s2245_s7 = int_to_ptr.vmem [resolvable:$true] %s1274_s7 }
  0x32   : > { %548 = vmatpush1.bf16.msra.mxu0 %v1699_v6  ;;  %1614 = vmatpush1.bf16.msra.mxu1 %v1699_v6  ;;  %v1718_v30 = vld [vmem:[%s1974_s17 + $0x48] sm:$0xff]   ;;  %v884_v32 = vld [vmem:[%s1992_s15 + $0x50] sm:$0xff]  ;;  %v886_v34 = vld [vmem:[%s1992_s15 + $0x60] sm:$0xff]  ;;  %s1746_s10 = scalar_lea.vmem %s2245_s7, 2048 }
  0x33   : > { %549 = vmatprep.subr.bf16.mxu0 %v1700_v7  ;;  %1607 = vmatprep.subr.bf16.mxu1 %v1700_v7  ;;  %v887_v33 = vld [vmem:[%s1992_s15 + $0x68] sm:$0xff]  ;;  %v1719_v35 = vld [vmem:[%s1974_s17 + $0x10] sm:$0xff]   ;;  %v889_v37 = vld [vmem:[%s1992_s15 + $0x78] sm:$0xff]  ;;  %p1747_p10 = scmp.ne.s32.totalorder %s2245_s7, %s1746_s10 }
  0x34   : > { %923 = vperm.xlu1 %1690, %v877_v16   ;;  %913 = vperm.xlu0 %1689, %v875_v17   ;;  %v1720_v36 = vld [vmem:[%s1974_s17 + $0x50] sm:$0xff]   ;;  %v891_v39 = vld [vmem:[%s1992_s15 + $0x88] sm:$0xff]  ;;  %v890_v40 = vld [vmem:[%s1992_s15 + $0x80] sm:$0xff]  ;;  %v839_v16 = vshrl.u32 %v838_v13, 7 }
  0x35   : > { %v888_v38 = vld [vmem:[%s1992_s15 + $0x70] sm:$0xff]  ;;  %v1721_v41 = vld [vmem:[%s1974_s17 + $0x18] sm:$0xff]   ;;  %v895_v45 = vld [vmem:[%s1992_s15 + $0xa8] sm:$0xff]  ;;  %p1748_p11 = pnand %p1747_p10, %p1905_p4 }
  0x36   : > { %550 = vmatpush1.bf16.msra.mxu0 %v1702_v8  ;;  %1615 = vmatpush1.bf16.msra.mxu1 %v1702_v8  ;;  %v1722_v42 = vld [vmem:[%s1974_s17 + $0x58] sm:$0xff]   ;;  %v892_v44 = vld [vmem:[%s1992_s15 + $0x90] sm:$0xff]  ;;  %v894_v46 = vld [vmem:[%s1992_s15 + $0xa0] sm:$0xff] }
  0x37   : > { %551 = vmatprep.subr.bf16.mxu0 %v1703_v9  ;;  %1608 = vmatprep.subr.bf16.mxu1 %v1703_v9  ;;  %v893_v43 = vld [vmem:[%s1992_s15 + $0x98] sm:$0xff]  ;;  %v1723_v47 = vld [vmem:[%s1974_s17 + $0x20] sm:$0xff]   ;;  %v896_v50 = vld [vmem:[%s1992_s15 + $0xb0] sm:$0xff]  ;;  %p1749_p13 = pneg %p1748_p11 }
  0x38   : > { %933 = vperm.xlu1 %1690, %v879_v20   ;;  %928 = vperm.xlu0 %1689, %v878_v21   ;;  %v1724_v48 = vld [vmem:[%s1974_s17 + $0x60] sm:$0xff]   ;;  %v897_v49 = vld [vmem:[%s1992_s15 + $0xb8] sm:$0xff]  ;;  %v899_v51 = vld [vmem:[%s1992_s15 + $0xc8] sm:$0xff] }
  0x39   : > { %v898_v52 = vld [vmem:[%s1992_s15 + $0xc0] sm:$0xff]  ;;  %v1725_v53 = vld [vmem:[%s1974_s17 + $0x28] sm:$0xff]   ;;  %v901_v55 = vld [vmem:[%s1992_s15 + $0xd8] sm:$0xff] }
  0x3a   : > { %552 = vmatpush1.bf16.msra.mxu0 %v1705_v10  ;;  %1616 = vmatpush1.bf16.msra.mxu1 %v1705_v10  ;;  %v1726_v54 = vld [vmem:[%s1974_s17 + $0x68] sm:$0xff]   ;;  %v900_v56 = vld [vmem:[%s1992_s15 + $0xd0] sm:$0xff]  ;;  %v902_v58 = vld [vmem:[%s1992_s15 + $0xe0] sm:$0xff] }
  0x3b   : > { %553 = vmatprep.subr.bf16.mxu0 %v1706_v11  ;;  %1609 = vmatprep.subr.bf16.mxu1 %v1706_v11  ;;  %v903_v57 = vld [vmem:[%s1992_s15 + $0xe8] sm:$0xff]  ;;  %v1727_v59 = vld [vmem:[%s1974_s17 + $0x30] sm:$0xff]   ;;  %v905_v61 = vld [vmem:[%s1992_s15 + $0xf8] sm:$0xff] }
  0x3c   : > { %943 = vperm.xlu1 %1690, %v881_v25   ;;  %938 = vperm.xlu0 %1689, %v880_v26   ;;  %v1728_v60 = vld [vmem:[%s1974_s17 + $0x70] sm:$0xff]   ;;  %v1729_v63 = vld [vmem:[%s1974_s17 + $0x38] sm:$0xff]   ;;  %v836_v17 = vld [vmem:[%s306_s16] sm:$0x1] }
  0x3d   : > { %v904_v62 = vld [vmem:[%s1992_s15 + $0xf0] sm:$0xff]  ;;  %v1730_v0 = vld [vmem:[%s1974_s17 + $0x78] sm:$0xff]   ;;  %s736_s17 = sld [smem:[#allocation2]] }
  0x3e   : > { %554 = vmatpush1.bf16.msra.mxu0 %v1708_v12  ;;  %1617 = vmatpush1.bf16.msra.mxu1 %v1708_v12 }
  0x3f   : > { %555 = vmatprep.subr.bf16.mxu0 %v1709_v15  ;;  %1610 = vmatprep.subr.bf16.mxu1 %v1709_v15 }
  0x40   : > { %953 = vperm.xlu1 %1690, %v883_v27   ;;  %948 = vperm.xlu0 %1689, %v882_v28  }
  0x42   : > { %556 = vmatpush1.bf16.msra.mxu0 %v1711_v18  ;;  %1618 = vmatpush1.bf16.msra.mxu1 %v1711_v18  ;;  %v837_v18 = vunpack.c.l.bf16 %v836_v17 }
  0x43   : > { %557 = vmatprep.subr.bf16.mxu0 %v1712_v19  ;;  %1611 = vmatprep.subr.bf16.mxu1 %v1712_v19  ;;  %v840_v19 = vsub.s32 0, %v839_v16  ;;  %v2099_v20 = vstv %s736_s17  ;;  %s1750_s17 = sshll.u32 %s1832_s12, 4  ;;  %s1751_s17 = int_to_ptr.vmem [resolvable:$false] %s1750_s17 }
  0x44   : > { %963 = vperm.xlu1 %1690, %v885_v31   ;;  %958 = vperm.xlu0 %1689, %v884_v32   ;;  %p1753_p0 = scmp.lt.s32.totalorder %s2245_s7, %s1751_s17 }
  0x46   : > { %558 = vmatpush1.bf16.msra.mxu0 %v1714_v22  ;;  %1619 = vmatpush1.bf16.msra.mxu1 %v1714_v22 }
  0x48   : > { %973 = vperm.xlu1 %1690, %v887_v33   ;;  %968 = vperm.xlu0 %1689, %v886_v34  }
  0x49   : > { %576 = vmatmul.mubr.bf16.vlgmr.msra.gmra.mrb[0].mxu0 %v1715_v23  ;;  %656 = vmatmul.mubr.bf16.vlgmr.msra.gmra.mrb[0].mxu1 %v1716_v24  ;;  %v2105_v23 = vstv %s1436_s13  ;;  %s1752_s13 = scalar_lea.vmem %s1751_s17, 4096 }
  0x4a   : > { %585 = vmatprep.mubr.bf16.mxu0 %v1831_v2  ;;  %665 = vmatprep.mubr.bf16.mxu1 %v1831_v2  ;;  %p1754_p1 = scmp.lt.s32.totalorder %s1752_s13, %s1746_s10 }
  0x4c   : > { %983 = vperm.xlu1 %1690, %v889_v37   ;;  %978 = vperm.xlu0 %1689, %v888_v38   ;;  %p1755_p2 = por %p1754_p1, %p1753_p0 }
  0x4e   : > { %p1756_p3 = pnand %p1755_p2, %p1749_p13 }
  0x50   : > { %993 = vperm.xlu1 %1690, %v891_v39   ;;  %988 = vperm.xlu0 %1689, %v890_v40  }
  0x51   : > { %586 = vmatmul.mubr.bf16.gmra.mrb[4].mxu0 %v1717_v29  ;;  %666 = vmatmul.mubr.bf16.gmra.mrb[4].mxu1 %v1718_v30  ;;  %v2109_v30 = vrot.slane %v837_v18, %v840_v19 }
  0x52   : > { %595 = vmatprep.mubr.bf16.mxu0 %v1831_v2  ;;  %675 = vmatprep.mubr.bf16.mxu1 %v1831_v2 }
  0x54   : > { %1003 = vperm.xlu1 %1690, %v893_v43   ;;  %998 = vperm.xlu0 %1689, %v892_v44  }
  0x58   : > { %1013 = vperm.xlu1 %1690, %v895_v45   ;;  %1008 = vperm.xlu0 %1689, %v894_v46  }
  0x59   : > { %596 = vmatmul.mubr.bf16.gmra.mrb[8].mxu0 %v1719_v35  ;;  %676 = vmatmul.mubr.bf16.gmra.mrb[8].mxu1 %v1720_v36 }
  0x5a   : > { %605 = vmatprep.mubr.bf16.mxu0 %v1831_v2  ;;  %685 = vmatprep.mubr.bf16.mxu1 %v1831_v2 }
  0x5c   : > { %1023 = vperm.xlu1 %1690, %v897_v49   ;;  %1018 = vperm.xlu0 %1689, %v896_v50  }
  0x60   : > { %1033 = vperm.xlu1 %1690, %v899_v51   ;;  %1028 = vperm.xlu0 %1689, %v898_v52  }
  0x61   : > { %606 = vmatmul.mubr.bf16.gmra.mrb[12].mxu0 %v1721_v41  ;;  %686 = vmatmul.mubr.bf16.gmra.mrb[12].mxu1 %v1722_v42 }
  0x62   : > { %615 = vmatprep.mubr.bf16.mxu0 %v1831_v2  ;;  %695 = vmatprep.mubr.bf16.mxu1 %v1831_v2 }
  0x64   : > { %1043 = vperm.xlu1 %1690, %v901_v55   ;;  %1038 = vperm.xlu0 %1689, %v900_v56  }
  0x68   : > { %1053 = vperm.xlu1 %1690, %v903_v57   ;;  %1048 = vperm.xlu0 %1689, %v902_v58  }
  0x69   : > { %616 = vmatmul.mubr.bf16.gmra.mrb[16].mxu0 %v1723_v47  ;;  %696 = vmatmul.mubr.bf16.gmra.mrb[16].mxu1 %v1724_v48 }
  0x6a   : > { %625 = vmatprep.mubr.bf16.mxu0 %v1831_v2  ;;  %705 = vmatprep.mubr.bf16.mxu1 %v1831_v2 }
  0x6c   : > { %1063 = vperm.xlu1 %1690, %v905_v61   ;;  %1058 = vperm.xlu0 %1689, %v904_v62  }
  0x71   : > { %626 = vmatmul.mubr.bf16.gmra.mrb[20].mxu0 %v1725_v53  ;;  %706 = vmatmul.mubr.bf16.gmra.mrb[20].mxu1 %v1726_v54 }
  0x72   : > { %635 = vmatprep.mubr.bf16.mxu0 %v1831_v2  ;;  %715 = vmatprep.mubr.bf16.mxu1 %v1831_v2 }
  0x79   : > { %636 = vmatmul.mubr.bf16.gmra.mrb[24].mxu0 %v1727_v59  ;;  %716 = vmatmul.mubr.bf16.gmra.mrb[24].mxu1 %v1728_v60 }
  0x7a   : > { %645 = vmatprep.mubr.bf16.mxu0 %v1831_v2  ;;  %725 = vmatprep.mubr.bf16.mxu1 %v1831_v2 }
  0x81   : > { %646 = vmatmul.mubr.bf16.gmra.mrb[28].mxu0 %v1729_v63  ;;  %726 = vmatmul.mubr.bf16.gmra.mrb[28].mxu1 %v1730_v0 }
  0xaf   : > { %v2071_v1 = vpop.permute.xlu1 %918  ;;  %v909_v3 = vpop.permute.xlu0 %908 }
  0xb3   : > { %v2073_v4 = vpop.permute.xlu1 %923  ;;  %v914_v5 = vpop.permute.xlu0 %913 }
  0xb7   : > { %v2075_v6 = vpop.permute.xlu1 %933  ;;  %v2077_v7 = vpop.permute.xlu0 %928 }
  0xbb   : > { %v2079_v8 = vpop.permute.xlu1 %943  ;;  %v2081_v9 = vpop.permute.xlu0 %938 }
  0xbf   : > { %v2083_v2 = vpop.permute.xlu1 %953  ;;  %v2085_v10 = vpop.permute.xlu0 %948 }
  0xc3   : > { %v2087_v11 = vpop.permute.xlu1 %963  ;;  %v2089_v12 = vpop.permute.xlu0 %958 }
  0xc7   : > { %v2095_v14 = vpop.permute.xlu1 %973  ;;  %v2097_v15 = vpop.permute.xlu0 %968 }
  0xcb   : > { %v2101_v21 = vpop.permute.xlu1 %983  ;;  %v2103_v22 = vpop.permute.xlu0 %978 }
  0xcf   : > { %v994_v47 = vpop.permute.xlu1 %993  ;;  %v989_v48 = vpop.permute.xlu0 %988 }
 0x11c   : > { %v577_v24 = vpop.f32.mrb[0].mxu0  ;;  %v657_v25 = vpop.f32.mrb[0].mxu1 }
 0x11d   : > { %v738_v26 = vmul.f32 %v2099_v20, %v577_v24  ;;  %v754_v27 = vmul.f32 %v2099_v20, %v657_v25  ;;  %v579_v28 = vpop.f32.mrb[1].mxu0  ;;  %v659_v29 = vpop.f32.mrb[1].mxu1 }
 0x11e   : > { %v772_v31 = vmul.f32 %v2105_v23, %v579_v28  ;;  %v788_v32 = vmul.f32 %v2105_v23, %v659_v29  ;;  %v581_v33 = vpop.f32.mrb[2].mxu0  ;;  %v661_v34 = vpop.f32.mrb[2].mxu1 }
 0x11f   : > { %v739_v35 = vmul.f32 %v2099_v20, %v581_v33  ;;  %v755_v36 = vmul.f32 %v2099_v20, %v661_v34  ;;  %v583_v37 = vpop.f32.mrb[3].mxu0  ;;  %v663_v38 = vpop.f32.mrb[3].mxu1 }
 0x120   : > { %v804_v39 = vadd.f32 %v772_v31, %v738_v26  ;;  %v820_v40 = vadd.f32 %v788_v32, %v754_v27  ;;  %v773_v41 = vmul.f32 %v2105_v23, %v583_v37  ;;  %v789_v42 = vmul.f32 %v2105_v23, %v663_v38  ;;  %v1004_v29 = vpop.permute.xlu1 %1003  ;;  %v999_v31 = vpop.permute.xlu0 %998 }
 0x122   : > { %v842_v43 = vadd.f32 %v2109_v30, %v804_v39  ;;  %v858_v44 = vadd.f32 %v2109_v30, %v820_v40  ;;  %v805_v45 = vadd.f32 %v773_v41, %v739_v35  ;;  %v821_v46 = vadd.f32 %v789_v42, %v755_v36 }
 0x124   : > { %v843_v49 = vadd.f32 %v2109_v30, %v805_v45  ;;  %v859_v50 = vadd.f32 %v2109_v30, %v821_v46  ;;  %v587_v51 = vpop.f32.mrb[4].mxu0  ;;  %v667_v52 = vpop.f32.mrb[4].mxu1  ;;  %v1066_v53 = vmul.f32 %v909_v3, %v842_v43  ;;  %v1082_v54 = vmul.f32 %v989_v48, %v858_v44 }
 0x125   : > { %v740_v55 = vmul.f32 %v2099_v20, %v587_v51  ;;  %v756_v56 = vmul.f32 %v2099_v20, %v667_v52  ;;  %v589_v57 = vpop.f32.mrb[5].mxu0  ;;  %v669_v58 = vpop.f32.mrb[5].mxu1 }
 0x126   : > { %v1067_v59 = vmul.f32 %v914_v5, %v843_v49  ;;  %v1083_v60 = vmul.f32 %v994_v47, %v859_v50  ;;  %v774_v61 = vmul.f32 %v2105_v23, %v589_v57  ;;  %v790_v62 = vmul.f32 %v2105_v23, %v669_v58  ;;  %v591_v63 = vpop.f32.mrb[6].mxu0  ;;  %v671_v0 = vpop.f32.mrb[6].mxu1 }
 0x127   : > { %v741_v13 = vmul.f32 %v2099_v20, %v591_v63  ;;  %v757_v16 = vmul.f32 %v2099_v20, %v671_v0  ;;  %v593_v3 = vpop.f32.mrb[7].mxu0  ;;  %v673_v17 = vpop.f32.mrb[7].mxu1 }
 0x128   : > { %v1512_v18 = vpack.c.bf16 %v1067_v59, %v1066_v53  ;;  %v1552_v19 = vpack.c.bf16 %v1083_v60, %v1082_v54  ;;  %v806_v24 = vadd.f32 %v774_v61, %v740_v55  ;;  %v822_v25 = vadd.f32 %v790_v62, %v756_v56  ;;  %v1014_v62 = vpop.permute.xlu1 %1013  ;;  %v1009_v63 = vpop.permute.xlu0 %1008 }
 0x129   : > { %v775_v26 = vmul.f32 %v2105_v23, %v593_v3  ;;  %v791_v5 = vmul.f32 %v2105_v23, %v673_v17 }
 0x12a   : > { %1513 = vst [vmem:[%s2132_s25] sm:$0xff] %v1512_v18   ;;  %1596 = vst [vmem:[%s2132_s25 + $0x40] sm:$0xff] %v1552_v19   ;;  %v844_v27 = vadd.f32 %v2109_v30, %v806_v24  ;;  %v860_v28 = vadd.f32 %v2109_v30, %v822_v25 }
 0x12b   : > { %v807_v32 = vadd.f32 %v775_v26, %v741_v13  ;;  %v823_v33 = vadd.f32 %v791_v5, %v757_v16 }
 0x12c   : > { %v597_v34 = vpop.f32.mrb[8].mxu0  ;;  %v677_v35 = vpop.f32.mrb[8].mxu1  ;;  %v1068_v42 = vmul.f32 %v2071_v1, %v844_v27  ;;  %v1084_v43 = vmul.f32 %v999_v31, %v860_v28 }
 0x12d   : > { %v845_v36 = vadd.f32 %v2109_v30, %v807_v32  ;;  %v861_v37 = vadd.f32 %v2109_v30, %v823_v33  ;;  %v742_v38 = vmul.f32 %v2099_v20, %v597_v34  ;;  %v758_v39 = vmul.f32 %v2099_v20, %v677_v35  ;;  %v599_v40 = vpop.f32.mrb[9].mxu0  ;;  %v679_v41 = vpop.f32.mrb[9].mxu1 }
 0x12e   : > { %v776_v44 = vmul.f32 %v2105_v23, %v599_v40  ;;  %v792_v45 = vmul.f32 %v2105_v23, %v679_v41  ;;  %v601_v46 = vpop.f32.mrb[10].mxu0  ;;  %v681_v47 = vpop.f32.mrb[10].mxu1 }
 0x12f   : > { %v1069_v48 = vmul.f32 %v2073_v4, %v845_v36  ;;  %v1085_v49 = vmul.f32 %v1004_v29, %v861_v37  ;;  %v743_v50 = vmul.f32 %v2099_v20, %v601_v46  ;;  %v759_v51 = vmul.f32 %v2099_v20, %v681_v47  ;;  %v603_v52 = vpop.f32.mrb[11].mxu0  ;;  %v683_v53 = vpop.f32.mrb[11].mxu1 }
 0x130   : > { %v808_v54 = vadd.f32 %v776_v44, %v742_v38  ;;  %v824_v1 = vadd.f32 %v792_v45, %v758_v39  ;;  %v777_v55 = vmul.f32 %v2105_v23, %v603_v52  ;;  %v793_v56 = vmul.f32 %v2105_v23, %v683_v53  ;;  %v1019_v44 = vpop.permute.xlu0 %1018 }
 0x131   : > { %v1517_v57 = vpack.c.bf16 %v1069_v48, %v1068_v42  ;;  %v1557_v58 = vpack.c.bf16 %v1085_v49, %v1084_v43  ;;  %v1024_v43 = vpop.permute.xlu1 %1023 }
 0x132   : > { %v846_v59 = vadd.f32 %v2109_v30, %v808_v54  ;;  %v862_v4 = vadd.f32 %v2109_v30, %v824_v1  ;;  %v809_v60 = vadd.f32 %v777_v55, %v743_v50  ;;  %v825_v61 = vadd.f32 %v793_v56, %v759_v51 }
 0x133   : > { %1589 = vst [vmem:[%s2132_s25 + $0x8] sm:$0xff] %v1517_v57   ;;  %1597 = vst [vmem:[%s2132_s25 + $0x48] sm:$0xff] %v1557_v58  }
 0x134   : > { %v847_v0 = vadd.f32 %v2109_v30, %v809_v60  ;;  %v863_v13 = vadd.f32 %v2109_v30, %v825_v61  ;;  %v607_v16 = vpop.f32.mrb[12].mxu0  ;;  %v687_v3 = vpop.f32.mrb[12].mxu1  ;;  %v1070_v17 = vmul.f32 %v2077_v7, %v846_v59  ;;  %v1086_v18 = vmul.f32 %v1009_v63, %v862_v4 }
 0x135   : > { %v744_v19 = vmul.f32 %v2099_v20, %v607_v16  ;;  %v760_v24 = vmul.f32 %v2099_v20, %v687_v3  ;;  %v609_v25 = vpop.f32.mrb[13].mxu0  ;;  %v689_v26 = vpop.f32.mrb[13].mxu1 }
 0x136   : > { %v1071_v5 = vmul.f32 %v2075_v6, %v847_v0  ;;  %v1087_v27 = vmul.f32 %v1014_v62, %v863_v13  ;;  %v778_v28 = vmul.f32 %v2105_v23, %v609_v25  ;;  %v794_v29 = vmul.f32 %v2105_v23, %v689_v26  ;;  %v611_v31 = vpop.f32.mrb[14].mxu0  ;;  %v691_v32 = vpop.f32.mrb[14].mxu1 }
 0x137   : > { %v745_v7 = vmul.f32 %v2099_v20, %v611_v31  ;;  %v761_v33 = vmul.f32 %v2099_v20, %v691_v32  ;;  %v613_v34 = vpop.f32.mrb[15].mxu0  ;;  %v693_v35 = vpop.f32.mrb[15].mxu1 }
 0x138   : > { %v1522_v36 = vpack.c.bf16 %v1071_v5, %v1070_v17  ;;  %v1562_v37 = vpack.c.bf16 %v1087_v27, %v1086_v18  ;;  %v810_v38 = vadd.f32 %v778_v28, %v744_v19  ;;  %v826_v39 = vadd.f32 %v794_v29, %v760_v24  ;;  %v1034_v26 = vpop.permute.xlu1 %1033  ;;  %v1029_v5 = vpop.permute.xlu0 %1028 }
 0x139   : > { %v779_v6 = vmul.f32 %v2105_v23, %v613_v34  ;;  %v795_v40 = vmul.f32 %v2105_v23, %v693_v35 }
 0x13a   : > { %1590 = vst [vmem:[%s2132_s25 + $0x10] sm:$0xff] %v1522_v36   ;;  %1598 = vst [vmem:[%s2132_s25 + $0x50] sm:$0xff] %v1562_v37   ;;  %v848_v41 = vadd.f32 %v2109_v30, %v810_v38  ;;  %v864_v42 = vadd.f32 %v2109_v30, %v826_v39 }
 0x13b   : > { %v811_v45 = vadd.f32 %v779_v6, %v745_v7  ;;  %v827_v46 = vadd.f32 %v795_v40, %v761_v33 }
 0x13c   : > { %v617_v47 = vpop.f32.mrb[16].mxu0  ;;  %v697_v48 = vpop.f32.mrb[16].mxu1  ;;  %v1072_v1 = vmul.f32 %v2081_v9, %v848_v41  ;;  %v1088_v55 = vmul.f32 %v1019_v44, %v864_v42 }
 0x13d   : > { %v849_v49 = vadd.f32 %v2109_v30, %v811_v45  ;;  %v865_v50 = vadd.f32 %v2109_v30, %v827_v46  ;;  %v746_v51 = vmul.f32 %v2099_v20, %v617_v47  ;;  %v762_v52 = vmul.f32 %v2099_v20, %v697_v48  ;;  %v619_v53 = vpop.f32.mrb[17].mxu0  ;;  %v699_v54 = vpop.f32.mrb[17].mxu1 }
 0x13e   : > { %v780_v56 = vmul.f32 %v2105_v23, %v619_v53  ;;  %v796_v57 = vmul.f32 %v2105_v23, %v699_v54  ;;  %v621_v58 = vpop.f32.mrb[18].mxu0  ;;  %v701_v59 = vpop.f32.mrb[18].mxu1 }
 0x13f   : > { %v1073_v4 = vmul.f32 %v2079_v8, %v849_v49  ;;  %v1089_v60 = vmul.f32 %v1024_v43, %v865_v50  ;;  %v747_v61 = vmul.f32 %v2099_v20, %v621_v58  ;;  %v763_v62 = vmul.f32 %v2099_v20, %v701_v59  ;;  %v623_v63 = vpop.f32.mrb[19].mxu0  ;;  %v703_v0 = vpop.f32.mrb[19].mxu1 }
 0x140   : > { %v812_v13 = vadd.f32 %v780_v56, %v746_v51  ;;  %v828_v9 = vadd.f32 %v796_v57, %v762_v52  ;;  %v781_v16 = vmul.f32 %v2105_v23, %v623_v63  ;;  %v797_v3 = vmul.f32 %v2105_v23, %v703_v0  ;;  %v1044_v52 = vpop.permute.xlu1 %1043  ;;  %v1039_v53 = vpop.permute.xlu0 %1038 }
 0x141   : > { %v1527_v17 = vpack.c.bf16 %v1073_v4, %v1072_v1  ;;  %v1567_v18 = vpack.c.bf16 %v1089_v60, %v1088_v55 }
 0x142   : > { %v850_v19 = vadd.f32 %v2109_v30, %v812_v13  ;;  %v866_v8 = vadd.f32 %v2109_v30, %v828_v9  ;;  %v813_v24 = vadd.f32 %v781_v16, %v747_v61  ;;  %v829_v25 = vadd.f32 %v797_v3, %v763_v62 }
 0x143   : > { %1591 = vst [vmem:[%s2132_s25 + $0x18] sm:$0xff] %v1527_v17   ;;  %1599 = vst [vmem:[%s2132_s25 + $0x58] sm:$0xff] %v1567_v18  }
 0x144   : > { %v851_v27 = vadd.f32 %v2109_v30, %v813_v24  ;;  %v867_v28 = vadd.f32 %v2109_v30, %v829_v25  ;;  %v627_v29 = vpop.f32.mrb[20].mxu0  ;;  %v707_v31 = vpop.f32.mrb[20].mxu1  ;;  %v1074_v32 = vmul.f32 %v2085_v10, %v850_v19  ;;  %v1090_v7 = vmul.f32 %v1029_v5, %v866_v8 }
 0x145   : > { %v748_v33 = vmul.f32 %v2099_v20, %v627_v29  ;;  %v764_v34 = vmul.f32 %v2099_v20, %v707_v31  ;;  %v629_v35 = vpop.f32.mrb[21].mxu0  ;;  %v709_v36 = vpop.f32.mrb[21].mxu1 }
 0x146   : > { %v1075_v37 = vmul.f32 %v2083_v2, %v851_v27  ;;  %v1091_v38 = vmul.f32 %v1034_v26, %v867_v28  ;;  %v782_v39 = vmul.f32 %v2105_v23, %v629_v35  ;;  %v798_v6 = vmul.f32 %v2105_v23, %v709_v36  ;;  %v631_v40 = vpop.f32.mrb[22].mxu0  ;;  %v711_v41 = vpop.f32.mrb[22].mxu1 }
 0x147   : > { %v749_v10 = vmul.f32 %v2099_v20, %v631_v40  ;;  %v765_v42 = vmul.f32 %v2099_v20, %v711_v41  ;;  %v633_v43 = vpop.f32.mrb[23].mxu0  ;;  %v713_v44 = vpop.f32.mrb[23].mxu1 }
 0x148   : > { %v1532_v45 = vpack.c.bf16 %v1075_v37, %v1074_v32  ;;  %v1572_v46 = vpack.c.bf16 %v1091_v38, %v1090_v7  ;;  %v814_v47 = vadd.f32 %v782_v39, %v748_v33  ;;  %v830_v48 = vadd.f32 %v798_v6, %v764_v34  ;;  %v1054_v7 = vpop.permute.xlu1 %1053  ;;  %v1049_v33 = vpop.permute.xlu0 %1048 }
 0x149   : > { %v783_v2 = vmul.f32 %v2105_v23, %v633_v43  ;;  %v799_v49 = vmul.f32 %v2105_v23, %v713_v44 }
 0x14a   : > { %1592 = vst [vmem:[%s2132_s25 + $0x20] sm:$0xff] %v1532_v45   ;;  %1600 = vst [vmem:[%s2132_s25 + $0x60] sm:$0xff] %v1572_v46   ;;  %v852_v50 = vadd.f32 %v2109_v30, %v814_v47  ;;  %v868_v51 = vadd.f32 %v2109_v30, %v830_v48 }
 0x14b   : > { %v815_v54 = vadd.f32 %v783_v2, %v749_v10  ;;  %v831_v1 = vadd.f32 %v799_v49, %v765_v42 }
 0x14c   : > { %v637_v55 = vpop.f32.mrb[24].mxu0  ;;  %v717_v56 = vpop.f32.mrb[24].mxu1  ;;  %v1076_v62 = vmul.f32 %v2089_v12, %v852_v50  ;;  %v1092_v63 = vmul.f32 %v1039_v53, %v868_v51 }
 0x14d   : > { %v853_v57 = vadd.f32 %v2109_v30, %v815_v54  ;;  %v869_v58 = vadd.f32 %v2109_v30, %v831_v1  ;;  %v750_v59 = vmul.f32 %v2099_v20, %v637_v55  ;;  %v766_v4 = vmul.f32 %v2099_v20, %v717_v56  ;;  %v639_v60 = vpop.f32.mrb[25].mxu0  ;;  %v719_v61 = vpop.f32.mrb[25].mxu1 }
 0x14e   : > { %v784_v0 = vmul.f32 %v2105_v23, %v639_v60  ;;  %v800_v13 = vmul.f32 %v2105_v23, %v719_v61  ;;  %v641_v9 = vpop.f32.mrb[26].mxu0  ;;  %v721_v16 = vpop.f32.mrb[26].mxu1 }
 0x14f   : > { %v1077_v3 = vmul.f32 %v2087_v11, %v853_v57  ;;  %v1093_v17 = vmul.f32 %v1044_v52, %v869_v58  ;;  %v751_v18 = vmul.f32 %v2099_v20, %v641_v9  ;;  %v767_v19 = vmul.f32 %v2099_v20, %v721_v16  ;;  %v643_v8 = vpop.f32.mrb[27].mxu0  ;;  %v723_v24 = vpop.f32.mrb[27].mxu1 }
 0x150   : > { %v816_v25 = vadd.f32 %v784_v0, %v750_v59  ;;  %v832_v12 = vadd.f32 %v800_v13, %v766_v4  ;;  %v785_v26 = vmul.f32 %v2105_v23, %v643_v8  ;;  %v801_v5 = vmul.f32 %v2105_v23, %v723_v24  ;;  %v1064_v59 = vpop.permute.xlu1 %1063 }
 0x151   : > { %v1537_v27 = vpack.c.bf16 %v1077_v3, %v1076_v62  ;;  %v1577_v28 = vpack.c.bf16 %v1093_v17, %v1092_v63 }
 0x152   : > { %v854_v29 = vadd.f32 %v2109_v30, %v816_v25  ;;  %v870_v11 = vadd.f32 %v2109_v30, %v832_v12  ;;  %v817_v31 = vadd.f32 %v785_v26, %v751_v18  ;;  %v833_v32 = vadd.f32 %v801_v5, %v767_v19 }
 0x153   : > { %1593 = vst [vmem:[%s2132_s25 + $0x28] sm:$0xff] %v1537_v27   ;;  %1601 = vst [vmem:[%s2132_s25 + $0x68] sm:$0xff] %v1577_v28  }
 0x154   : > { %v855_v34 = vadd.f32 %v2109_v30, %v817_v31  ;;  %v871_v35 = vadd.f32 %v2109_v30, %v833_v32  ;;  %v647_v36 = vpop.f32.mrb[28].mxu0  ;;  %v727_v37 = vpop.f32.mrb[28].mxu1  ;;  %v1078_v38 = vmul.f32 %v2097_v15, %v854_v29  ;;  %v1094_v39 = vmul.f32 %v1049_v33, %v870_v11 }
 0x155   : > { %v752_v6 = vmul.f32 %v2099_v20, %v647_v36  ;;  %v768_v40 = vmul.f32 %v2099_v20, %v727_v37  ;;  %v649_v41 = vpop.f32.mrb[29].mxu0  ;;  %v729_v10 = vpop.f32.mrb[29].mxu1 }
 0x156   : > { %v1079_v42 = vmul.f32 %v2095_v14, %v855_v34  ;;  %v1095_v43 = vmul.f32 %v1054_v7, %v871_v35  ;;  %v786_v44 = vmul.f32 %v2105_v23, %v649_v41  ;;  %v802_v45 = vmul.f32 %v2105_v23, %v729_v10  ;;  %v651_v46 = vpop.f32.mrb[30].mxu0  ;;  %v731_v47 = vpop.f32.mrb[30].mxu1 }
 0x157   : > { %v753_v15 = vmul.f32 %v2099_v20, %v651_v46  ;;  %v769_v48 = vmul.f32 %v2099_v20, %v731_v47  ;;  %v653_v2 = vpop.f32.mrb[31].mxu0  ;;  %v733_v49 = vpop.f32.mrb[31].mxu1 }
 0x158   : > { %v1542_v50 = vpack.c.bf16 %v1079_v42, %v1078_v38  ;;  %v1582_v51 = vpack.c.bf16 %v1095_v43, %v1094_v39  ;;  %v818_v14 = vadd.f32 %v786_v44, %v752_v6  ;;  %v834_v52 = vadd.f32 %v802_v45, %v768_v40 }
 0x159   : > { %v787_v53 = vmul.f32 %v2105_v23, %v653_v2  ;;  %v803_v54 = vmul.f32 %v2105_v23, %v733_v49  ;;  %v1059_v23 = vpop.permute.xlu0 %1058 }
 0x15a   : > { %1594 = vst [vmem:[%s2132_s25 + $0x30] sm:$0xff] %v1542_v50   ;;  %1602 = vst [vmem:[%s2132_s25 + $0x70] sm:$0xff] %v1582_v51   ;;  %v856_v1 = vadd.f32 %v2109_v30, %v818_v14  ;;  %v872_v55 = vadd.f32 %v2109_v30, %v834_v52 }
 0x15b   : > { %v819_v56 = vadd.f32 %v787_v53, %v753_v15  ;;  %v835_v20 = vadd.f32 %v803_v54, %v769_v48 }
 0x15c   : > { %v1080_v4 = vmul.f32 %v2103_v22, %v856_v1  ;;  %v1096_v60 = vmul.f32 %v1059_v23, %v872_v55 }
 0x15d   : > { %v857_v57 = vadd.f32 %v2109_v30, %v819_v56  ;;  %v873_v58 = vadd.f32 %v2109_v30, %v835_v20 }
 0x15f   : > { %v1081_v61 = vmul.f32 %v2101_v21, %v857_v57  ;;  %v1097_v62 = vmul.f32 %v1064_v59, %v873_v58 }
 0x161   : > { %v1547_v30 = vpack.c.bf16 %v1081_v61, %v1080_v4  ;;  %v1587_v63 = vpack.c.bf16 %v1097_v62, %v1096_v60 }
 0x163   : > { %1595 = vst [vmem:[%s2132_s25 + $0x38] sm:$0xff] %v1547_v30   ;;  %1603 = vst [vmem:[%s2132_s25 + $0x78] sm:$0xff] %v1587_v63  }
 0x164   : > { %1759 = shalt.err (!%p1756_p3)
}
 0x165   : > { %s1760_s14 = scalar_lea.hbm %s2243_s11, 2048  ;;  %s1764_s27 = scalar_lea.hbm %s2302_s5, 4096 }
 0x166   : > { %p1761_p5 = scmp.ne.s32.totalorder %s2243_s11, %s1760_s14  ;;  %p1765_p9 = scmp.lt.u32.totalorder %s2243_s11, %s2302_s5 }
 0x167   : > { %p1766_p12 = scmp.lt.u32.totalorder %s1764_s27, %s1760_s14  ;;  %p1768_p11 = scmp.lt.u32.totalorder %s1760_s14, %s2243_s11 }
 0x168   : > { %p1762_p6 = pnand %p1761_p5, %p1905_p4 }
 0x169   : > { %p1767_p10 = por %p1766_p12, %p1765_p9 }
 0x16a   : > { %p1763_p7 = pneg %p1762_p6 }
 0x16b   : > { %p1769_p13 = por %p1768_p11, %p1767_p10 }
 0x16d   : > { %p1770_p0 = pnand %p1769_p13, %p1763_p7 }
 0x16f   : > { %1773 = shalt.err (!%p1770_p0)
}
 0x170   : > { %s1833_s29 = smov 64   ;;  %s1834_s8 = smov 4  }
 0x171   : > { %1624 = dma.vmem_to_hbm [thread:$0]  (%p1905_p4), %s2245_s7, 2048, %s2243_s11, %s2251_s21, %s1833_s29, %s1833_s29, %s1834_s8  }
 0x172 PF: > { %p1636_p1 = scmp.ge.s32.totalorder %s1828_s23, 2  ;;  %s1289_s9 = sand.u32 1, %s1808_s18  }
 0x173   : > { %s1290_s10 = scalar_lea.sflag [#allocation3], %s1289_s9 }
 0x174   : > { %p1631_p2 = pnand %p1636_p1, %p1912_p8 }
 0x176   : > { %1803 = dma.done.wait (!%p1631_p2), %s1290_s10, 2048  }
 0x177   : > { %1805 = vsyncadd (!%p1631_p2), %s1290_s10, 4294965248  ;;  %s19_s23 = sadd.s32 1, %s1828_s23   ;;  %s2307_s18 = smov %s1812_s19 }
 0x178   : > { %p16_p3 = scmp.ge.s32.totalorder %s19_s23, 4   ;;  %s2308_s19 = smov %s1816_s20 }
 0x179   : > { %s2309_s20 = smov %s1918_s6  ;;  %s2310_s21 = smov %s1824_s22 }
 0x17a   : > { %s2311_s22 = smov %s2313_s26  ;;  %18 = sbr.rel (!%p16_p3) target bundleno = 5 (0x5), region = 86 }
 0x181   :  { %1295 = vsyncpa [#allocation3], 1 }
 0x182   :  { %1297 = vsyncpa [#allocation3 + $0x1], 1 }
 0x183   :  { %1298 = vsyncpa [#allocation4], 1 }
 0x184   :  { %1300 = vsyncpa [#allocation4 + $0x1], 1 }

</bundles_post_ra>
